<compile_context>
chip_gen: v7x
topology: tpu7x:2x2x1
jax: 0.10.0
libtpu: 0.0.40
codegen_flags: <defaults>
</compile_context>

<pallas_src>
import jax
import jax.numpy as jnp
from jax.experimental import pallas as pl
from jax.experimental.pallas import tpu as pltpu

LANE = 128          # TPU lane width: hidden/output feature dims are padded to this
DEFAULT_TB = 1024   # batch-tile rows per grid step (pass tb=2048 for very large batches)


def _round_up(n, m):
    return ((n + m - 1) // m) * m


def dqn_kernel(x_ref, w1_ref, b1_ref, w2_ref, b2_ref, w3_ref, b3_ref, o_ref):
    """One batch tile per grid step; weights/biases stay VMEM-resident."""
    x = x_ref[...].astype(w1_ref.dtype)                               # f32 -> bf16 in-kernel
    h1 = jnp.dot(x, w1_ref[...], preferred_element_type=jnp.float32) + b1_ref[...]
    h1 = jnp.maximum(h1, 0.0)                                         # f32 bias/ReLU (v5e-safe)
    h2 = jnp.dot(h1.astype(w2_ref.dtype), w2_ref[...],
                 preferred_element_type=jnp.float32) + b2_ref[...]
    h2 = jnp.maximum(h2, 0.0)
    out = jnp.dot(h2.astype(w3_ref.dtype), w3_ref[...],
                  preferred_element_type=jnp.float32) + b3_ref[...]
    o_ref[...] = out.astype(o_ref.dtype)                              # lane-dense (tb,128) bf16 store


def init_params(key, d_in, h1, h2, d_out):
    """PyTorch-style nn.Linear init: U(-1/sqrt(fan_in), 1/sqrt(fan_in)).

    Weights are stored (in, out) == PyTorch (out, in) transposed, so the kernel
    computes x @ W + b (identical math to nn.Linear). Biases are (1, out).
    """
    ks = jax.random.split(key, 6)

    def linear(kw, kb, fan_in, fan_out):
        bound = 1.0 / jnp.sqrt(jnp.float32(fan_in))
        w = jax.random.uniform(kw, (fan_in, fan_out), jnp.float32, -bound, bound)
        b = jax.random.uniform(kb, (1, fan_out), jnp.float32, -bound, bound)
        return w, b

    w1, b1 = linear(ks[0], ks[1], d_in, h1)
    w2, b2 = linear(ks[2], ks[3], h1, h2)
    w3, b3 = linear(ks[4], ks[5], h2, d_out)
    return {"w1": w1, "b1": b1, "w2": w2, "b2": b2, "w3": w3, "b3": b3}


def prepare_params(params, dtype=jnp.bfloat16):
    """Zero-pad hidden/output dims to multiples of 128 lanes; cast weights to bf16.

    fc1's input (K) dim is deliberately left unpadded so raw activations can stream
    straight into the kernel. Padding is mathematically inert: padded hidden units
    are relu(0)=0 and padded output columns are exactly 0 (b3 padding is zero) --
    keep that invariant so argmax over the padded output never picks phantom actions.
    """
    def pad2(a, rows, cols):
        return jnp.pad(a, ((0, rows - a.shape[0]), (0, cols - a.shape[1])))

    d_in, h1 = params["w1"].shape
    _, h2 = params["w2"].shape
    _, d_out = params["w3"].shape
    hp1, hp2, dp_out = _round_up(h1, LANE), _round_up(h2, LANE), _round_up(d_out, LANE)

    prepped = {
        "w1": pad2(params["w1"], d_in, hp1).astype(dtype),    # K left unpadded
        "b1": pad2(params["b1"], 1, hp1).astype(jnp.float32),
        "w2": pad2(params["w2"], hp1, hp2).astype(dtype),
        "b2": pad2(params["b2"], 1, hp2).astype(jnp.float32),
        "w3": pad2(params["w3"], hp2, dp_out).astype(dtype),
        "b3": pad2(params["b3"], 1, dp_out).astype(jnp.float32),
    }
    meta = {"d_in": d_in, "d_out": d_out, "hp1": hp1, "hp2": hp2, "dp_out": dp_out}
    return prepped, meta


def dqn_forward(x, prepped, meta, *, tb=DEFAULT_TB, full_output=False):
    """x: (B, d_in) float32.

    full_output=False: (B, d_out) float32 Q-values (nn.Module semantics).
    full_output=True : (B, 128-padded) bf16 Q-values, padded action columns are
                       exactly 0; consumers should fuse their slice / argmax here.
    """
    B, d_in = x.shape
    assert d_in == meta["d_in"]
    hp1, hp2, dp_out = meta["hp1"], meta["hp2"], meta["dp_out"]
    w1, b1 = prepped["w1"], prepped["b1"]
    w2, b2 = prepped["w2"], prepped["b2"]
    w3, b3 = prepped["w3"], prepped["b3"]

    # Batch tile: multiple of 128 (keeps bf16 output sublane-packing happy), clamped
    # so tiny batches aren't one huge padded tile and the grid keeps >= 2 steps when
    # possible (v7x megacore). Ragged last block is handled by Pallas masking.
    tb = max(LANE, (int(tb) // LANE) * LANE)
    if B > LANE:
        tb = min(tb, _round_up((B + 1) // 2, LANE))
    else:
        tb = LANE
    grid = (pl.cdiv(B, tb),)

    flops = 2 * B * (d_in * hp1 + hp1 * hp2 + hp2 * dp_out)
    bytes_accessed = int(
        x.size * x.dtype.itemsize
        + B * dp_out * 2
        + sum(int(a.size) * a.dtype.itemsize for a in (w1, b1, w2, b2, w3, b3))
    )

    out_p = pl.pallas_call(
        dqn_kernel,
        out_shape=jax.ShapeDtypeStruct((B, dp_out), jnp.bfloat16),
        grid=grid,
        in_specs=[
            pl.BlockSpec((tb, d_in), lambda i: (i, 0)),     # raw activations stream in (no pre-pad)
            pl.BlockSpec((d_in, hp1), lambda i: (0, 0)),    # resident weights / biases
            pl.BlockSpec((1, hp1), lambda i: (0, 0)),
            pl.BlockSpec((hp1, hp2), lambda i: (0, 0)),
            pl.BlockSpec((1, hp2), lambda i: (0, 0)),
            pl.BlockSpec((hp2, dp_out), lambda i: (0, 0)),
            pl.BlockSpec((1, dp_out), lambda i: (0, 0)),
        ],
        out_specs=pl.BlockSpec((tb, dp_out), lambda i: (i, 0)),
        compiler_params=pltpu.CompilerParams(
            dimension_semantics=("parallel",)),
        cost_estimate=pl.CostEstimate(
            flops=flops, transcendentals=0, bytes_accessed=bytes_accessed),
    )(x, w1, b1, w2, b2, w3, b3)

    if full_output:
        return out_p
    # Convenience path matching the PyTorch module's output exactly (shape + f32).
    return out_p[:, :meta["d_out"]].astype(jnp.float32)


if __name__ == "__main__":
    # Synthetic config: board 8x8 -> 64 cells; algorithm.linear = [128, 128].
    BOARD_X, BOARD_Y = 8, 8
    D_IN = BOARD_X * BOARD_Y          # 64
    H1, H2 = 128, 128
    D_OUT = D_IN                      # 64
    BATCH = 256                       # tiled as 2 x 128 rows -> 2-step "parallel" grid

    key = jax.random.PRNGKey(0)
    kx, kp = jax.random.split(key)
    x = jax.random.normal(kx, (BATCH, D_IN), jnp.float32)
    params = init_params(kp, D_IN, H1, H2, D_OUT)
    prepped, meta = prepare_params(params)

    out = dqn_forward(x, prepped, meta)
    out = jax.block_until_ready(out)
    assert out.shape == (BATCH, D_OUT)

    # Fused-consumer path: padded bf16 output, padded action columns exactly zero.
    out_full = jax.block_until_ready(dqn_forward(x, prepped, meta, full_output=True))
    assert out_full.shape == (BATCH, meta["dp_out"]) and out_full.dtype == jnp.bfloat16
    assert bool(jnp.all(out_full[:, D_OUT:] == 0))

    # Check 1: against a reference with the same bf16 weight/activation/output casts
    # (only MXU accumulation order differs).
    w1f = prepped["w1"][:D_IN, :H1].astype(jnp.float32)
    w2f = prepped["w2"][:H1, :H2].astype(jnp.float32)
    w3f = prepped["w3"][:H2, :D_OUT].astype(jnp.float32)
    xb = x.astype(jnp.bfloat16).astype(jnp.float32)
    r = jnp.maximum(xb @ w1f + params["b1"], 0.0)
    r = r.astype(jnp.bfloat16).astype(jnp.float32)
    r = jnp.maximum(r @ w2f + params["b2"], 0.0)
    r = r.astype(jnp.bfloat16).astype(jnp.float32)
    ref_bf16 = (r @ w3f + params["b3"]).astype(jnp.bfloat16).astype(jnp.float32)
    assert jnp.allclose(out, ref_bf16, atol=2e-2, rtol=2e-2)

    # Check 2: forward semantics vs. the full-f32 PyTorch-equivalent MLP
    # (tolerance accounts for bf16 weight/activation/output quantization).
    ref = jnp.maximum(x @ params["w1"] + params["b1"], 0.0)
    ref = jnp.maximum(ref @ params["w2"] + params["b2"], 0.0)
    ref = ref @ params["w3"] + params["b3"]
    assert jnp.allclose(out, ref, atol=5e-2, rtol=5e-2)

    print("KERNEL_OK")
</pallas_src>

<mosaic_0001>
module attributes {stable_mosaic.version = 11 : i64} {
  func.func @dqn_kernel(%arg0: i32, %arg1: memref<128x64xf32, #tpu.memory_space<vmem>>, %arg2: memref<64x128xbf16, #tpu.memory_space<vmem>>, %arg3: memref<1x128xf32, #tpu.memory_space<vmem>>, %arg4: memref<128x128xbf16, #tpu.memory_space<vmem>>, %arg5: memref<1x128xf32, #tpu.memory_space<vmem>>, %arg6: memref<128x128xbf16, #tpu.memory_space<vmem>>, %arg7: memref<1x128xf32, #tpu.memory_space<vmem>>, %arg8: memref<128x128xbf16, #tpu.memory_space<vmem>>) attributes {dimension_semantics = [#tpu.dimension_semantics<parallel>], iteration_bounds = array<i64: 2>, scalar_prefetch = 0 : i64, scratch_operands = 0 : i64, tpu.core_type = #tpu.core_type<tc>, window_params = [{transform_indices = @transform_0, window_bounds = array<i64: 128, 64>}, {pipeline_mode = #tpu.pipeline_mode<synchronous>, transform_indices = @transform_1, window_bounds = array<i64: 64, 128>}, {pipeline_mode = #tpu.pipeline_mode<synchronous>, transform_indices = @transform_2, window_bounds = array<i64: 1, 128>}, {pipeline_mode = #tpu.pipeline_mode<synchronous>, transform_indices = @transform_3, window_bounds = array<i64: 128, 128>}, {pipeline_mode = #tpu.pipeline_mode<synchronous>, transform_indices = @transform_4, window_bounds = array<i64: 1, 128>}, {pipeline_mode = #tpu.pipeline_mode<synchronous>, transform_indices = @transform_5, window_bounds = array<i64: 128, 128>}, {pipeline_mode = #tpu.pipeline_mode<synchronous>, transform_indices = @transform_6, window_bounds = array<i64: 1, 128>}, {transform_indices = @transform_7, window_bounds = array<i64: 128, 128>}]} {
    %c0 = arith.constant 0 : index
    %c0_0 = arith.constant 0 : index
    %0 = vector.load %arg1[%c0, %c0_0] : memref<128x64xf32, #tpu.memory_space<vmem>>, vector<128x64xf32>
    %1 = arith.truncf %0 : vector<128x64xf32> to vector<128x64xbf16>
    %c0_1 = arith.constant 0 : index
    %c0_2 = arith.constant 0 : index
    %2 = vector.load %arg2[%c0_1, %c0_2] : memref<64x128xbf16, #tpu.memory_space<vmem>>, vector<64x128xbf16>
    %cst = arith.constant dense<0.000000e+00> : vector<128x128xf32>
    %3 = tpu.matmul %1, %2, %cst {dimension_numbers = #tpu.dot_dimension_numbers<[1], [0], [0], [1], [0, 0, 1, 1], [], []>} : vector<128x64xbf16>, vector<64x128xbf16>, vector<128x128xf32> -> vector<128x128xf32>
    %c0_3 = arith.constant 0 : index
    %c0_4 = arith.constant 0 : index
    %4 = vector.load %arg3[%c0_3, %c0_4] : memref<1x128xf32, #tpu.memory_space<vmem>>, vector<1x128xf32>
    %5 = vector.broadcast %4 : vector<1x128xf32> to vector<128x128xf32>
    %6 = arith.addf %3, %5 : vector<128x128xf32>
    %cst_5 = arith.constant 0.000000e+00 : f32
    %7 = vector.broadcast %cst_5 : f32 to vector<128x128xf32>
    %8 = arith.maximumf %6, %7 : vector<128x128xf32>
    %9 = arith.truncf %8 : vector<128x128xf32> to vector<128x128xbf16>
    %c0_6 = arith.constant 0 : index
    %c0_7 = arith.constant 0 : index
    %10 = vector.load %arg4[%c0_6, %c0_7] : memref<128x128xbf16, #tpu.memory_space<vmem>>, vector<128x128xbf16>
    %cst_8 = arith.constant dense<0.000000e+00> : vector<128x128xf32>
    %11 = tpu.matmul %9, %10, %cst_8 {dimension_numbers = #tpu.dot_dimension_numbers<[1], [0], [0], [1], [0, 0, 1, 1], [], []>} : vector<128x128xbf16>, vector<128x128xbf16>, vector<128x128xf32> -> vector<128x128xf32>
    %c0_9 = arith.constant 0 : index
    %c0_10 = arith.constant 0 : index
    %12 = vector.load %arg5[%c0_9, %c0_10] : memref<1x128xf32, #tpu.memory_space<vmem>>, vector<1x128xf32>
    %13 = vector.broadcast %12 : vector<1x128xf32> to vector<128x128xf32>
    %14 = arith.addf %11, %13 : vector<128x128xf32>
    %cst_11 = arith.constant 0.000000e+00 : f32
    %15 = vector.broadcast %cst_11 : f32 to vector<128x128xf32>
    %16 = arith.maximumf %14, %15 : vector<128x128xf32>
    %17 = arith.truncf %16 : vector<128x128xf32> to vector<128x128xbf16>
    %c0_12 = arith.constant 0 : index
    %c0_13 = arith.constant 0 : index
    %18 = vector.load %arg6[%c0_12, %c0_13] : memref<128x128xbf16, #tpu.memory_space<vmem>>, vector<128x128xbf16>
    %cst_14 = arith.constant dense<0.000000e+00> : vector<128x128xf32>
    %19 = tpu.matmul %17, %18, %cst_14 {dimension_numbers = #tpu.dot_dimension_numbers<[1], [0], [0], [1], [0, 0, 1, 1], [], []>} : vector<128x128xbf16>, vector<128x128xbf16>, vector<128x128xf32> -> vector<128x128xf32>
    %c0_15 = arith.constant 0 : index
    %c0_16 = arith.constant 0 : index
    %20 = vector.load %arg7[%c0_15, %c0_16] : memref<1x128xf32, #tpu.memory_space<vmem>>, vector<1x128xf32>
    %21 = vector.broadcast %20 : vector<1x128xf32> to vector<128x128xf32>
    %22 = arith.addf %19, %21 : vector<128x128xf32>
    %23 = arith.truncf %22 : vector<128x128xf32> to vector<128x128xbf16>
    %c0_17 = arith.constant 0 : index
    %c0_18 = arith.constant 0 : index
    %24 = vector.load %arg8[%c0_17, %c0_18] : memref<128x128xbf16, #tpu.memory_space<vmem>>, vector<128x128xbf16>
    tpu.vector_store %arg8[%c0_17, %c0_18], %23 {strides = array<i32>} : memref<128x128xbf16, #tpu.memory_space<vmem>>, vector<128x128xbf16>,
    return
  }
  func.func @transform_0(%arg0: i32) -> (i32, i32) {
    %c0_i32 = arith.constant 0 : i32
    %c0_i32_0 = arith.constant 0 : i32
    return %arg0, %c0_i32 : i32, i32
  }
  func.func @transform_1(%arg0: i32) -> (i32, i32) {
    %c0_i32 = arith.constant 0 : i32
    %c0_i32_0 = arith.constant 0 : i32
    %c0_i32_1 = arith.constant 0 : i32
    return %c0_i32, %c0_i32_0 : i32, i32
  }
  func.func @transform_2(%arg0: i32) -> (i32, i32) {
    %c0_i32 = arith.constant 0 : i32
    %c0_i32_0 = arith.constant 0 : i32
    %c0_i32_1 = arith.constant 0 : i32
    return %c0_i32, %c0_i32_0 : i32, i32
  }
  func.func @transform_3(%arg0: i32) -> (i32, i32) {
    %c0_i32 = arith.constant 0 : i32
    %c0_i32_0 = arith.constant 0 : i32
    %c0_i32_1 = arith.constant 0 : i32
    return %c0_i32, %c0_i32_0 : i32, i32
  }
  func.func @transform_4(%arg0: i32) -> (i32, i32) {
    %c0_i32 = arith.constant 0 : i32
    %c0_i32_0 = arith.constant 0 : i32
    %c0_i32_1 = arith.constant 0 : i32
    return %c0_i32, %c0_i32_0 : i32, i32
  }
  func.func @transform_5(%arg0: i32) -> (i32, i32) {
    %c0_i32 = arith.constant 0 : i32
    %c0_i32_0 = arith.constant 0 : i32
    %c0_i32_1 = arith.constant 0 : i32
    return %c0_i32, %c0_i32_0 : i32, i32
  }
  func.func @transform_6(%arg0: i32) -> (i32, i32) {
    %c0_i32 = arith.constant 0 : i32
    %c0_i32_0 = arith.constant 0 : i32
    %c0_i32_1 = arith.constant 0 : i32
    return %c0_i32, %c0_i32_0 : i32, i32
  }
  func.func @transform_7(%arg0: i32) -> (i32, i32) {
    %c0_i32 = arith.constant 0 : i32
    %c0_i32_0 = arith.constant 0 : i32
    return %arg0, %c0_i32 : i32, i32
  }
}

</mosaic_0001>

<bundles_post_ra>
// kernel: tpu_custom_call.1
= control target key start
LH: loop header
LB: loop body
LE: loop exit
PB: predicated region body
PF: predicated region fallthrough
CT: control target
= control target key end

     0   :  { %12 = vsyncpa [#allocation3], 0  ;;  %s1693_s0 = inlined_call_operand.vmem [shape: f32[256,64], index: 0, kind: input, shape index: {}]   ;;  %s1694_s1 = inlined_call_operand.vmem [shape: bf16[64,128], index: 1, kind: input, shape index: {}]   ;;  %s1695_s2 = inlined_call_operand.vmem [shape: f32[1,128], index: 2, kind: input, shape index: {}]   ;;  %s1696_s3 = inlined_call_operand.vmem [shape: bf16[128,128], index: 3, kind: input, shape index: {}]   ;;  %s1697_s4 = inlined_call_operand.vmem [shape: f32[1,128], index: 4, kind: input, shape index: {}]   ;;  %s1698_s5 = inlined_call_operand.vmem [shape: bf16[128,128], index: 5, kind: input, shape index: {}]   ;;  %s1699_s6 = inlined_call_operand.vmem [shape: f32[1,128], index: 6, kind: input, shape index: {}]   ;;  %s1700_s7 = inlined_call_operand.hbm [shape: bf16[256,128], index: 7, kind: output, shape index: {}]  }
   0x1   :  { %14 = vsyncpa [#allocation3 + $0x1], 0  ;;  %s1445_s24 = smov 0   ;;  %s1447_s25 = smov 0  }
   0x2   :  { %s1449_s26 = smov 0   ;;  %s1451_s27 = smov 0  }
   0x3 LB: > { %s1466_s28 = sadd.s32 4294967295, %s1400_s27   ;;  %s1006_s29 = sadd.s32 4294967294, %s1400_s27   ;;  %s1400_s27 = sphi %s1451_s27, %s1706_s27   ;;  %s1396_s26 = sphi %s1449_s26, %s1705_s26   ;;  %s1392_s25 = sphi %s1447_s25, %s1704_s25   ;;  %s1388_s24 = sphi %s1445_s24, %s1703_s24  }
   0x4   : > { %s1470_s30 = sadd.s32 1, %s1400_s27   ;;  %s179_s8 = sadd.s32 1, %s1396_s26 }
   0x5   : > { %s176_s9 = ssub.s32 %s1400_s27, %s1470_s30  ;;  %p189_p0 = scmp.ne.s32.totalorder %s1396_s26, %s1392_s25 }
   0x6   : > { %p177_p1 = scmp.eq.s32.totalorder %s176_s9, 0  ;;  %p190_p2 = scmp.eq.s32.totalorder %s1466_s28, 1 }
   0x7   : > { %p195_p3 = scmp.ne.s32.totalorder %s1392_s25, %s1388_s24  ;;  %p196_p4 = scmp.eq.s32.totalorder %s1006_s29, 1 }
   0x8   : > { %s1481_s10 = scalar_select %p177_p1, %s1396_s26, %s179_s8  }
   0x9   : > { %p1483_p5 = por %p190_p2, %p189_p0  ;;  %p1487_p6 = por %p196_p4, %p195_p3 }
   0xa   : > { %p1009_p7 = scmp.ge.s32.totalorder %s1400_s27, 1  ;;  %p241_p8 = scmp.lt.s32.totalorder %s1400_s27, 3 }
   0xc   : > { %p242_p9 = pnand %p1009_p7, %p241_p8 }
   0xd   : > { %v1318_v0 = vld [vmem:[%s1694_s1] sm:$0xff] (!%p242_p9)   ;;  %s1011_s15 = sshll.u32 (!%p242_p9), %s1466_s28, 4  ;;  %v1319_v1 = vld [vmem:[%s1694_s1 + $0x8] sm:$0xff] (!%p242_p9)   ;;  %v1320_v2 = vld [vmem:[%s1694_s1 + $0x10] sm:$0xff] (!%p242_p9)   ;;  %vm344_vm0 = vcmask (!%p242_p9), 523264   ;;  %s270_s20 = sand.u32 (!%p242_p9), 1, %s1392_s25  }
   0xe   : > { %245 = sbr.rel (%p242_p9) target bundleno = 732 (0x2dc), region = 48  ;;  %p274_p10 = scmp.lt.s32.totalorder (!%p242_p9), %s1011_s15, 31  ;;  %1173 = vmatprep.subr.bf16.mxu0 (!%p242_p9), %v1318_v0  ;;  %v1322_v3 = vld [vmem:[%s1696_s3] sm:$0xff] (!%p242_p9)   ;;  %v1323_v4 = vld [vmem:[%s1696_s3 + $0x8] sm:$0xff] (!%p242_p9)   ;;  %v1321_v7 = vld [vmem:[%s1694_s1 + $0x18] sm:$0xff] (!%p242_p9)  }
   0xf   : > { %1174 = vmatpush3.bf16.msra.mxu0 (!%p242_p9), %v1318_v0  ;;  %1197 = vmatprep.subr.bf16.mxu1 (!%p242_p9), %v1322_v3  ;;  %v1324_v9 = vld [vmem:[%s1696_s3 + $0x10] sm:$0xff] (!%p242_p9)   ;;  %v1325_v14 = vld [vmem:[%s1696_s3 + $0x18] sm:$0xff] (!%p242_p9)   ;;  %v1326_v17 = vld [vmem:[%s1696_s3 + $0x20] sm:$0xff] (!%p242_p9)   ;;  %s1010_s23 = sshll.u32 (!%p242_p9), %s270_s20, 6  ;;  %s1081_s8 = sshll.u32 (!%p242_p9), %s1466_s28, 10 }
  0x10   : > { %1175 = vmatprep.subr.bf16.mxu0 (!%p242_p9), %v1319_v1  ;;  %1198 = vmatpush3.bf16.msra.mxu1 (!%p242_p9), %v1322_v3  ;;  %v1327_v22 = vld [vmem:[%s1696_s3 + $0x28] sm:$0xff] (!%p242_p9)   ;;  %v1328_v34 = vld [vmem:[%s1696_s3 + $0x30] sm:$0xff] (!%p242_p9)   ;;  %v1329_v35 = vld [vmem:[%s1696_s3 + $0x38] sm:$0xff] (!%p242_p9)   ;;  %s1631_s29 = scalar_lea.vmem (!%p242_p9), [#allocation2], %s1010_s23  ;;  %s1644_s16 = scalar_lea.hbm (!%p242_p9), %s1700_s7, %s1081_s8 }
  0x11   : > { %1199 = vmatprep.subr.bf16.mxu1 (!%p242_p9), %v1323_v4  ;;  %v1330_v36 = vld [vmem:[%s1698_s5] sm:$0xff] (!%p242_p9)   ;;  %v1331_v37 = vld [vmem:[%s1698_s5 + $0x8] sm:$0xff] (!%p242_p9)   ;;  %v1332_v38 = vld [vmem:[%s1698_s5 + $0x10] sm:$0xff] (!%p242_p9)   ;;  %s944_s9 = sshll.u32 (!%p242_p9), %s1631_s29, 4  ;;  %s1652_s28 = scalar_lea.sflag (!%p242_p9), [#allocation3], %s270_s20  ;;  %s1646_s9 = int_to_ptr.vmem [resolvable:$true] %s944_s9 }
  0x12   : > { %v1571_v39 = vld [vmem:[%s1698_s5 + $0x18] sm:$0xff] (!%p242_p9)   ;;  %v1577_v40 = vld [vmem:[%s1698_s5 + $0x20] sm:$0xff] (!%p242_p9)   ;;  %v1584_v41 = vld [vmem:[%s1698_s5 + $0x28] sm:$0xff] (!%p242_p9)   ;;  %s1402_s17 = smov (!%p242_p9), [#allocation2]  }
  0x13   : > { %1176 = vmatpush3.bf16.msra.mxu0 (!%p242_p9), %v1319_v1  ;;  %v1592_v42 = vld [vmem:[%s1695_s2] ss:$0 sm:$0xff] (!%p242_p9)  ;;  %s1342_s18 = sshll.u32 (!%p242_p9), %s1402_s17, 4  ;;  %s1343_s18 = int_to_ptr.vmem [resolvable:$false] %s1342_s18 }
  0x14   : > { %1177 = vmatprep.subr.bf16.mxu0 (!%p242_p9), %v1320_v2  ;;  %1200 = vmatpush3.bf16.msra.mxu1 (!%p242_p9), %v1323_v4  ;;  %s1344_s19 = scalar_lea.vmem (!%p242_p9), %s1343_s18, 2048  ;;  %p1345_p0 = scmp.lt.s32.totalorder (!%p242_p9), %s1646_s9, %s1343_s18 }
  0x15   : > { %s1708_s15 = smov (!%p274_p10, %s1011_s15), 31  ;;  %1201 = vmatprep.subr.bf16.mxu1 %v1324_v9 }
  0x16   : > { %s1012_s22 = sshll.u32 %s1708_s15, 3 }
  0x17   : > { %s1512_s13 = scalar_lea.vmem %s1693_s0, %s1012_s22  ;;  %1178 = vmatpush3.bf16.msra.mxu0 %v1320_v2 }
  0x18   : > { %v281_v5 = vld [vmem:[%s1512_s13] sm:$0xff]  ;;  %v282_v6 = vld [vmem:[%s1512_s13 + $0x8] sm:$0xff]  ;;  %v283_v10 = vld [vmem:[%s1512_s13 + $0x10] sm:$0xff]  ;;  %1179 = vmatprep.subr.bf16.mxu0 %v1321_v7  ;;  %1202 = vmatpush3.bf16.msra.mxu1 %v1324_v9 }
  0x19   : > { %v297_v8 = vpack.c.bf16 %v282_v6, %v281_v5  ;;  %v284_v11 = vld [vmem:[%s1512_s13 + $0x18] sm:$0xff]  ;;  %v285_v12 = vld [vmem:[%s1512_s13 + $0x20] sm:$0xff]  ;;  %v286_v13 = vld [vmem:[%s1512_s13 + $0x28] sm:$0xff]  ;;  %1203 = vmatprep.subr.bf16.mxu1 %v1325_v14 }
  0x1a   : > { %v298_v15 = vpack.c.bf16 %v284_v11, %v283_v10  ;;  %v299_v16 = vpack.c.bf16 %v286_v13, %v285_v12  ;;  %v287_v18 = vld [vmem:[%s1512_s13 + $0x30] sm:$0xff]  ;;  %v288_v19 = vld [vmem:[%s1512_s13 + $0x38] sm:$0xff]  ;;  %v289_v20 = vld [vmem:[%s1512_s13 + $0x40] sm:$0xff] }
  0x1b   : > { %1181 = vmatprep.mubr.msk.bf16.mxu0 %vm344_vm0, %v297_v8  ;;  %1180 = vmatpush3.bf16.msra.mxu0 %v1321_v7  ;;  %v290_v21 = vld [vmem:[%s1512_s13 + $0x48] sm:$0xff]  ;;  %v300_v23 = vpack.c.bf16 %v288_v19, %v287_v18  ;;  %v291_v25 = vld [vmem:[%s1512_s13 + $0x50] sm:$0xff]  ;;  %v292_v26 = vld [vmem:[%s1512_s13 + $0x58] sm:$0xff] }
  0x1c   : > { %1204 = vmatpush3.bf16.msra.mxu1 %v1325_v14  ;;  %v301_v24 = vpack.c.bf16 %v290_v21, %v289_v20  ;;  %v293_v27 = vld [vmem:[%s1512_s13 + $0x60] sm:$0xff]  ;;  %v294_v28 = vld [vmem:[%s1512_s13 + $0x68] sm:$0xff]  ;;  %v302_v29 = vpack.c.bf16 %v292_v26, %v291_v25  ;;  %v295_v31 = vld [vmem:[%s1512_s13 + $0x70] sm:$0xff]  ;;  %1229 = vmatprep.subr.bf16.mxu0 %v1330_v36 }
  0x1d   : > { %1205 = vmatprep.subr.bf16.mxu1 %v1326_v17  ;;  %v303_v30 = vpack.c.bf16 %v294_v28, %v293_v27  ;;  %v296_v32 = vld [vmem:[%s1512_s13 + $0x78] sm:$0xff]  ;;  %s1338_s13 = scalar_lea.vmem %s1646_s9, 1024 }
  0x1e   : > { %1182 = vmatmul.mubr.msk.bf16.vlgmr.msra.gmra.mrb[0].mxu0 %vm344_vm0, %v298_v15  ;;  %v304_v33 = vpack.c.bf16 %v296_v32, %v295_v31  ;;  %p1339_p11 = scmp.ne.s32.totalorder %s1646_s9, %s1338_s13  ;;  %p1346_p1 = scmp.lt.s32.totalorder %s1344_s19, %s1338_s13 }
  0x1f   : > { %1185 = vmatprep.mubr.msk.bf16.mxu0 %vm344_vm0, %v299_v16  ;;  %1230 = vmatpush3.bf16.msra.mxu0 %v1330_v36 }
  0x20   : > { %1206 = vmatpush3.bf16.msra.mxu1 %v1326_v17  ;;  %1231 = vmatprep.subr.bf16.mxu0 %v1331_v37  ;;  %p1340_p12 = pnand %p1339_p11, %p1483_p5  ;;  %p1347_p2 = por %p1346_p1, %p1345_p0 }
  0x21   : > { %1207 = vmatprep.subr.bf16.mxu1 %v1327_v22 }
  0x22   : > { %p1341_p13 = pneg %p1340_p12 }
  0x23   : > { %1232 = vmatpush3.bf16.msra.mxu0 %v1331_v37 }
  0x24   : > { %1208 = vmatpush3.bf16.msra.mxu1 %v1327_v22  ;;  %1233 = vmatprep.subr.bf16.mxu0 %v1332_v38  ;;  %p1348_p3 = pnand %p1347_p2, %p1341_p13 }
  0x25   : > { %1209 = vmatprep.subr.bf16.mxu1 %v1328_v34 }
  0x26   : > { %1186 = vmatmul.mubr.msk.bf16.gmra.mrb[4].mxu0 %vm344_vm0, %v300_v23 }
  0x27   : > { %1189 = vmatprep.mubr.msk.bf16.mxu0 %vm344_vm0, %v301_v24  ;;  %1234 = vmatpush3.bf16.msra.mxu0 %v1332_v38 }
  0x28   : > { %1210 = vmatpush3.bf16.msra.mxu1 %v1328_v34  ;;  %1235 = vmatprep.subr.bf16.mxu0 %v1571_v39 }
  0x29   : > { %1211 = vmatprep.subr.bf16.mxu1 %v1329_v35 }
  0x2b   : > { %1236 = vmatpush3.bf16.msra.mxu0 %v1571_v39 }
  0x2c   : > { %1212 = vmatpush3.bf16.msra.mxu1 %v1329_v35  ;;  %1237 = vmatprep.subr.bf16.mxu0 %v1577_v40  ;;  %v1336_v35 = vld [vmem:[%s1698_s5 + $0x30] sm:$0xff]  }
  0x2d   : > { %1261 = vmatprep.subr.bf16.mxu1 %v1330_v36 }
  0x2e   : > { %1190 = vmatmul.mubr.msk.bf16.gmra.mrb[8].mxu0 %vm344_vm0, %v302_v29 }
  0x2f   : > { %1193 = vmatprep.mubr.msk.bf16.mxu0 %vm344_vm0, %v303_v30  ;;  %1238 = vmatpush3.bf16.msra.mxu0 %v1577_v40 }
  0x30   : > { %1239 = vmatprep.subr.bf16.mxu0 %v1584_v41 }
  0x33   : > { %1240 = vmatpush3.bf16.msra.mxu0 %v1584_v41 }
  0x34   : > { %1241 = vmatprep.subr.bf16.mxu0 %v1336_v35 }
  0x36   : > { %1194 = vmatmul.mubr.msk.bf16.gmra.mrb[12].mxu0 %vm344_vm0, %v304_v33 }
  0x37   : > { %1242 = vmatpush3.bf16.msra.mxu0 %v1336_v35 }
  0xf1   : > { %v1183_v43 = vpop.f32.mrb[0].mxu0 }
  0xf2   : > { %v412_v44 = vadd.f32 %v1183_v43, %v1592_v42  ;;  %v403_v45 = vpop.f32.mrb[1].mxu0 }
  0xf3   : > { %v404_v46 = vadd.f32 %v1592_v42, %v403_v45  ;;  %v1184_v47 = vpop.f32.mrb[2].mxu0 }
  0xf4   : > { %v415_v48 = vadd.f32 %v1184_v47, %v1592_v42  ;;  %v406_v49 = vpop.f32.mrb[3].mxu0  ;;  %v468_v51 = vmax.f32 %v412_v44, 0.0 }
  0xf5   : > { %v407_v50 = vadd.f32 %v1592_v42, %v406_v49  ;;  %v466_v53 = vmax.f32 %v404_v46, 0.0 }
  0xf6   : > { %v469_v52 = vmax.f32 %v415_v48, 0.0 }
  0xf7   : > { %v467_v54 = vmax.f32 %v407_v50, 0.0 }
  0xf8   : > { %v483_v55 = vpack.c.bf16 %v469_v52, %v468_v51 }
  0xf9   : > { %v1187_v56 = vpop.f32.mrb[4].mxu0  ;;  %v482_v57 = vpack.c.bf16 %v467_v54, %v466_v53 }
  0xfa   : > { %v428_v58 = vadd.f32 %v1187_v56, %v1592_v42  ;;  %v419_v59 = vpop.f32.mrb[5].mxu0 }
  0xfb   : > { %v420_v60 = vadd.f32 %v1592_v42, %v419_v59  ;;  %v1188_v61 = vpop.f32.mrb[6].mxu0  ;;  %1213 = vmatprep.mubr.bf16.mxu1 %v482_v57 }
  0xfc   : > { %v431_v62 = vadd.f32 %v1188_v61, %v1592_v42  ;;  %v422_v63 = vpop.f32.mrb[7].mxu0  ;;  %1214 = vmatmul.mubr.bf16.vlgmr.msra.gmra.mrb[0].mxu1 %v483_v55  ;;  %v472_v1 = vmax.f32 %v428_v58, 0.0 }
  0xfd   : > { %v423_v0 = vadd.f32 %v1592_v42, %v422_v63  ;;  %1269 = vmatpush3.bf16.msra.mxu1 %v1330_v36  ;;  %v470_v3 = vmax.f32 %v420_v60, 0.0  ;;  %v1337_v36 = vld [vmem:[%s1698_s5 + $0x38] sm:$0xff]  }
  0xfe   : > { %v473_v2 = vmax.f32 %v431_v62, 0.0  ;;  %1262 = vmatprep.subr.bf16.mxu1 %v1331_v37  ;;  %1243 = vmatprep.subr.bf16.mxu0 %v1337_v36 }
  0xff   : > { %v471_v4 = vmax.f32 %v423_v0, 0.0  ;;  %1244 = vmatpush3.bf16.msra.mxu0 %v1337_v36 }
 0x100   : > { %v485_v5 = vpack.c.bf16 %v473_v2, %v472_v1 }
 0x101   : > { %v484_v6 = vpack.c.bf16 %v471_v4, %v470_v3  ;;  %v1191_v7 = vpop.f32.mrb[8].mxu0  ;;  %1270 = vmatpush3.bf16.msra.mxu1 %v1331_v37  ;;  %v1026_v37 = vld [vmem:[%s1697_s4] ss:$0 sm:$0xff] }
 0x102   : > { %v444_v8 = vadd.f32 %v1191_v7, %v1592_v42  ;;  %v435_v9 = vpop.f32.mrb[9].mxu0  ;;  %1263 = vmatprep.subr.bf16.mxu1 %v1332_v38 }
 0x103   : > { %v436_v10 = vadd.f32 %v1592_v42, %v435_v9  ;;  %v1192_v11 = vpop.f32.mrb[10].mxu0  ;;  %1217 = vmatprep.mubr.bf16.mxu1 %v484_v6 }
 0x104   : > { %v447_v12 = vadd.f32 %v1192_v11, %v1592_v42  ;;  %v438_v13 = vpop.f32.mrb[11].mxu0  ;;  %1218 = vmatmul.mubr.bf16.gmra.mrb[4].mxu1 %v485_v5  ;;  %v476_v15 = vmax.f32 %v444_v8, 0.0 }
 0x105   : > { %v439_v14 = vadd.f32 %v1592_v42, %v438_v13  ;;  %1271 = vmatpush3.bf16.msra.mxu1 %v1332_v38  ;;  %v474_v17 = vmax.f32 %v436_v10, 0.0 }
 0x106   : > { %v477_v16 = vmax.f32 %v447_v12, 0.0  ;;  %1264 = vmatprep.subr.bf16.mxu1 %v1571_v39 }
 0x107   : > { %v475_v18 = vmax.f32 %v439_v14, 0.0 }
 0x108   : > { %v487_v19 = vpack.c.bf16 %v477_v16, %v476_v15 }
 0x109   : > { %v486_v20 = vpack.c.bf16 %v475_v18, %v474_v17  ;;  %v1195_v21 = vpop.f32.mrb[12].mxu0  ;;  %1272 = vmatpush3.bf16.msra.mxu1 %v1571_v39 }
 0x10a   : > { %v460_v22 = vadd.f32 %v1195_v21, %v1592_v42  ;;  %v451_v23 = vpop.f32.mrb[13].mxu0  ;;  %1265 = vmatprep.subr.bf16.mxu1 %v1577_v40 }
 0x10b   : > { %v452_v24 = vadd.f32 %v1592_v42, %v451_v23  ;;  %v1196_v25 = vpop.f32.mrb[14].mxu0  ;;  %1221 = vmatprep.mubr.bf16.mxu1 %v486_v20 }
 0x10c   : > { %v463_v26 = vadd.f32 %v1196_v25, %v1592_v42  ;;  %v454_v27 = vpop.f32.mrb[15].mxu0  ;;  %1222 = vmatmul.mubr.bf16.gmra.mrb[8].mxu1 %v487_v19  ;;  %v480_v29 = vmax.f32 %v460_v22, 0.0 }
 0x10d   : > { %v455_v28 = vadd.f32 %v1592_v42, %v454_v27  ;;  %1273 = vmatpush3.bf16.msra.mxu1 %v1577_v40  ;;  %v478_v31 = vmax.f32 %v452_v24, 0.0 }
 0x10e   : > { %v481_v30 = vmax.f32 %v463_v26, 0.0  ;;  %1266 = vmatprep.subr.bf16.mxu1 %v1584_v41 }
 0x10f   : > { %v479_v32 = vmax.f32 %v455_v28, 0.0 }
 0x110   : > { %v489_v33 = vpack.c.bf16 %v481_v30, %v480_v29 }
 0x111   : > { %v488_v34 = vpack.c.bf16 %v479_v32, %v478_v31  ;;  %1274 = vmatpush3.bf16.msra.mxu1 %v1584_v41  ;;  %v1035_v31 = vld [vmem:[%s1699_s6] ss:$0 sm:$0xff] }
 0x112   : > { %1267 = vmatprep.subr.bf16.mxu1 %v1336_v35 }
 0x113   : > { %1225 = vmatprep.mubr.bf16.mxu1 %v488_v34 }
 0x114   : > { %1226 = vmatmul.mubr.bf16.gmra.mrb[12].mxu1 %v489_v33 }
 0x115   : > { %1275 = vmatpush3.bf16.msra.mxu1 %v1336_v35 }
 0x116   : > { %1268 = vmatprep.subr.bf16.mxu1 %v1337_v36 }
 0x119   : > { %1276 = vmatpush3.bf16.msra.mxu1 %v1337_v36 }
 0x1cf   : > { %v1215_v38 = vpop.f32.mrb[0].mxu1 }
 0x1d0   : > { %v604_v39 = vadd.f32 %v1215_v38, %v1026_v37  ;;  %v595_v40 = vpop.f32.mrb[1].mxu1 }
 0x1d1   : > { %v596_v41 = vadd.f32 %v1026_v37, %v595_v40  ;;  %v1216_v42 = vpop.f32.mrb[2].mxu1 }
 0x1d2   : > { %v607_v43 = vadd.f32 %v1216_v42, %v1026_v37  ;;  %v598_v44 = vpop.f32.mrb[3].mxu1  ;;  %v660_v46 = vmax.f32 %v604_v39, 0.0 }
 0x1d3   : > { %v599_v45 = vadd.f32 %v1026_v37, %v598_v44  ;;  %v658_v48 = vmax.f32 %v596_v41, 0.0 }
 0x1d4   : > { %v661_v47 = vmax.f32 %v607_v43, 0.0 }
 0x1d5   : > { %v659_v49 = vmax.f32 %v599_v45, 0.0 }
 0x1d6   : > { %v675_v50 = vpack.c.bf16 %v661_v47, %v660_v46 }
 0x1d7   : > { %v674_v51 = vpack.c.bf16 %v659_v49, %v658_v48  ;;  %v1219_v52 = vpop.f32.mrb[4].mxu1 }
 0x1d8   : > { %v620_v53 = vadd.f32 %v1219_v52, %v1026_v37  ;;  %v611_v54 = vpop.f32.mrb[5].mxu1 }
 0x1d9   : > { %v612_v55 = vadd.f32 %v1026_v37, %v611_v54  ;;  %v1220_v56 = vpop.f32.mrb[6].mxu1  ;;  %1245 = vmatprep.mubr.bf16.mxu0 %v674_v51 }
 0x1da   : > { %v623_v57 = vadd.f32 %v1220_v56, %v1026_v37  ;;  %v614_v58 = vpop.f32.mrb[7].mxu1  ;;  %1246 = vmatmul.mubr.bf16.vlgmr.msra.gmra.mrb[16].mxu0 %v675_v50  ;;  %v664_v60 = vmax.f32 %v620_v53, 0.0 }
 0x1db   : > { %v615_v59 = vadd.f32 %v1026_v37, %v614_v58  ;;  %v662_v62 = vmax.f32 %v612_v55, 0.0 }
 0x1dc   : > { %v665_v61 = vmax.f32 %v623_v57, 0.0 }
 0x1dd   : > { %v663_v63 = vmax.f32 %v615_v59, 0.0 }
 0x1de   : > { %v677_v0 = vpack.c.bf16 %v665_v61, %v664_v60 }
 0x1df   : > { %v676_v1 = vpack.c.bf16 %v663_v63, %v662_v62  ;;  %v1223_v2 = vpop.f32.mrb[8].mxu1 }
 0x1e0   : > { %v636_v3 = vadd.f32 %v1223_v2, %v1026_v37  ;;  %v627_v4 = vpop.f32.mrb[9].mxu1 }
 0x1e1   : > { %v628_v5 = vadd.f32 %v1026_v37, %v627_v4  ;;  %v1224_v6 = vpop.f32.mrb[10].mxu1  ;;  %1249 = vmatprep.mubr.bf16.mxu0 %v676_v1 }
 0x1e2   : > { %v639_v7 = vadd.f32 %v1224_v6, %v1026_v37  ;;  %v630_v8 = vpop.f32.mrb[11].mxu1  ;;  %1250 = vmatmul.mubr.bf16.gmra.mrb[20].mxu0 %v677_v0  ;;  %v668_v10 = vmax.f32 %v636_v3, 0.0 }
 0x1e3   : > { %v631_v9 = vadd.f32 %v1026_v37, %v630_v8  ;;  %v666_v12 = vmax.f32 %v628_v5, 0.0 }
 0x1e4   : > { %v669_v11 = vmax.f32 %v639_v7, 0.0 }
 0x1e5   : > { %v667_v13 = vmax.f32 %v631_v9, 0.0 }
 0x1e6   : > { %v679_v14 = vpack.c.bf16 %v669_v11, %v668_v10 }
 0x1e7   : > { %v678_v15 = vpack.c.bf16 %v667_v13, %v666_v12  ;;  %v1227_v16 = vpop.f32.mrb[12].mxu1 }
 0x1e8   : > { %v652_v17 = vadd.f32 %v1227_v16, %v1026_v37  ;;  %v643_v18 = vpop.f32.mrb[13].mxu1 }
 0x1e9   : > { %v644_v19 = vadd.f32 %v1026_v37, %v643_v18  ;;  %v1228_v20 = vpop.f32.mrb[14].mxu1  ;;  %1253 = vmatprep.mubr.bf16.mxu0 %v678_v15 }
 0x1ea   : > { %v655_v21 = vadd.f32 %v1228_v20, %v1026_v37  ;;  %v646_v22 = vpop.f32.mrb[15].mxu1  ;;  %1254 = vmatmul.mubr.bf16.gmra.mrb[24].mxu0 %v679_v14  ;;  %v672_v24 = vmax.f32 %v652_v17, 0.0 }
 0x1eb   : > { %v647_v23 = vadd.f32 %v1026_v37, %v646_v22  ;;  %v670_v26 = vmax.f32 %v644_v19, 0.0 }
 0x1ec   : > { %v673_v25 = vmax.f32 %v655_v21, 0.0 }
 0x1ed   : > { %v671_v27 = vmax.f32 %v647_v23, 0.0 }
 0x1ee   : > { %v681_v28 = vpack.c.bf16 %v673_v25, %v672_v24 }
 0x1ef   : > { %v680_v29 = vpack.c.bf16 %v671_v27, %v670_v26 }
 0x1f1   : > { %1257 = vmatprep.mubr.bf16.mxu1 %v680_v29 }
 0x1f2   : > { %1258 = vmatmul.mubr.bf16.vlgmr.msra.gmra.mrb[16].mxu1 %v681_v28 }
 0x2ad   : > { %v1247_v30 = vpop.f32.mrb[16].mxu0 }
 0x2ae   : > { %v787_v32 = vpop.f32.mrb[17].mxu0  ;;  %v796_v34 = vadd.f32 %v1247_v30, %v1035_v31 }
 0x2af   : > { %v1248_v33 = vpop.f32.mrb[18].mxu0  ;;  %v788_v37 = vadd.f32 %v1035_v31, %v787_v32 }
 0x2b0   : > { %v799_v35 = vadd.f32 %v1248_v33, %v1035_v31  ;;  %v790_v36 = vpop.f32.mrb[19].mxu0 }
 0x2b1   : > { %v791_v38 = vadd.f32 %v1035_v31, %v790_v36 }
 0x2b2   : > { %v1090_v39 = vpack.c.bf16 %v799_v35, %v796_v34 }
 0x2b3   : > { %v1085_v40 = vpack.c.bf16 %v791_v38, %v788_v37 }
 0x2b4   : > { %1122 = vst [vmem:[%s1631_s29 + $0x8] sm:$0xff] %v1090_v39  }
 0x2b5   : > { %1086 = vst [vmem:[%s1631_s29] sm:$0xff] %v1085_v40   ;;  %v1251_v41 = vpop.f32.mrb[20].mxu0 }
 0x2b6   : > { %v803_v42 = vpop.f32.mrb[21].mxu0  ;;  %v812_v44 = vadd.f32 %v1251_v41, %v1035_v31 }
 0x2b7   : > { %v1252_v43 = vpop.f32.mrb[22].mxu0  ;;  %v804_v47 = vadd.f32 %v1035_v31, %v803_v42 }
 0x2b8   : > { %v815_v45 = vadd.f32 %v1252_v43, %v1035_v31  ;;  %v806_v46 = vpop.f32.mrb[23].mxu0 }
 0x2b9   : > { %v807_v48 = vadd.f32 %v1035_v31, %v806_v46 }
 0x2ba   : > { %v1100_v49 = vpack.c.bf16 %v815_v45, %v812_v44 }
 0x2bb   : > { %v1095_v50 = vpack.c.bf16 %v807_v48, %v804_v47 }
 0x2bc   : > { %1124 = vst [vmem:[%s1631_s29 + $0x18] sm:$0xff] %v1100_v49  }
 0x2bd   : > { %1123 = vst [vmem:[%s1631_s29 + $0x10] sm:$0xff] %v1095_v50   ;;  %v1255_v51 = vpop.f32.mrb[24].mxu0 }
 0x2be   : > { %v819_v52 = vpop.f32.mrb[25].mxu0  ;;  %v828_v54 = vadd.f32 %v1255_v51, %v1035_v31 }
 0x2bf   : > { %v1256_v53 = vpop.f32.mrb[26].mxu0  ;;  %v820_v57 = vadd.f32 %v1035_v31, %v819_v52 }
 0x2c0   : > { %v831_v55 = vadd.f32 %v1256_v53, %v1035_v31  ;;  %v822_v56 = vpop.f32.mrb[27].mxu0 }
 0x2c1   : > { %v823_v58 = vadd.f32 %v1035_v31, %v822_v56 }
 0x2c2   : > { %v1110_v59 = vpack.c.bf16 %v831_v55, %v828_v54 }
 0x2c3   : > { %v1105_v60 = vpack.c.bf16 %v823_v58, %v820_v57 }
 0x2c4   : > { %1126 = vst [vmem:[%s1631_s29 + $0x28] sm:$0xff] %v1110_v59  }
 0x2c5   : > { %1125 = vst [vmem:[%s1631_s29 + $0x20] sm:$0xff] %v1105_v60   ;;  %v1259_v61 = vpop.f32.mrb[16].mxu1 }
 0x2c6   : > { %v835_v62 = vpop.f32.mrb[17].mxu1  ;;  %v844_v0 = vadd.f32 %v1259_v61, %v1035_v31 }
 0x2c7   : > { %v1260_v63 = vpop.f32.mrb[18].mxu1  ;;  %v836_v3 = vadd.f32 %v1035_v31, %v835_v62 }
 0x2c8   : > { %v847_v1 = vadd.f32 %v1260_v63, %v1035_v31  ;;  %v838_v2 = vpop.f32.mrb[19].mxu1 }
 0x2c9   : > { %v839_v4 = vadd.f32 %v1035_v31, %v838_v2 }
 0x2ca   : > { %v1120_v5 = vpack.c.bf16 %v847_v1, %v844_v0 }
 0x2cb   : > { %v1115_v6 = vpack.c.bf16 %v839_v4, %v836_v3 }
 0x2cc   : > { %1128 = vst [vmem:[%s1631_s29 + $0x38] sm:$0xff] %v1120_v5  }
 0x2cd   : > { %1127 = vst [vmem:[%s1631_s29 + $0x30] sm:$0xff] %v1115_v6  }
 0x2ce   : > { %1351 = shalt.err (!%p1348_p3)
}
 0x2cf   : > { %s1352_s20 = scalar_lea.hbm %s1644_s16, 1024  ;;  %s1356_s23 = scalar_lea.hbm %s1700_s7, 2048 }
 0x2d0   : > { %p1353_p4 = scmp.ne.s32.totalorder %s1644_s16, %s1352_s20  ;;  %p1357_p9 = scmp.lt.u32.totalorder %s1644_s16, %s1700_s7 }
 0x2d1   : > { %p1358_p10 = scmp.lt.u32.totalorder %s1356_s23, %s1352_s20  ;;  %p1360_p12 = scmp.lt.u32.totalorder %s1352_s20, %s1644_s16 }
 0x2d2   : > { %p1354_p7 = pnand %p1353_p4, %p1483_p5 }
 0x2d3   : > { %p1359_p11 = por %p1358_p10, %p1357_p9 }
 0x2d4   : > { %p1355_p8 = pneg %p1354_p7 }
 0x2d5   : > { %p1361_p13 = por %p1360_p12, %p1359_p11 }
 0x2d7   : > { %p1362_p0 = pnand %p1361_p13, %p1355_p8 }
 0x2d9   : > { %1365 = shalt.err (!%p1362_p0)
}
 0x2da   : > { %s1403_s14 = smov 64   ;;  %s1404_s15 = smov 4  }
 0x2db   : > { %1277 = dma.vmem_to_hbm [thread:$0]  (%p1483_p5), %s1646_s9, 1024, %s1644_s16, %s1652_s28, %s1403_s14, %s1403_s14, %s1404_s15  }
 0x2dc PF: > { %p1283_p1 = scmp.ge.s32.totalorder %s1400_s27, 2  ;;  %s959_s13 = sand.u32 1, %s1388_s24  }
 0x2dd   : > { %s960_s17 = scalar_lea.sflag [#allocation3], %s959_s13 }
 0x2de   : > { %p1280_p2 = pnand %p1283_p1, %p1487_p6 }
 0x2e0   : > { %1383 = dma.done.wait (!%p1280_p2), %s960_s17, 1024  }
 0x2e1   : > { %1385 = vsyncadd (!%p1280_p2), %s960_s17, 4294966272  ;;  %p17_p3 = scmp.ge.s32.totalorder %s1470_s30, 4   ;;  %s1703_s24 = smov %s1392_s25 }
 0x2e2   : > { %s1704_s25 = smov %s1396_s26  ;;  %s1705_s26 = smov %s1481_s10 }
 0x2e3   : > { %s1706_s27 = smov %s1470_s30  ;;  %19 = sbr.rel (!%p17_p3) target bundleno = 3 (0x3), region = 83 }
 0x2ea   :  { %965 = vsyncpa [#allocation3], 1 }
 0x2eb   :  { %967 = vsyncpa [#allocation3 + $0x1], 1 }

</bundles_post_ra>
